<compile_context>
chip_gen: v7x
topology: tpu7x:2x2x1
jax: 0.10.0
libtpu: 0.0.40
codegen_flags: <defaults>
</compile_context>

<pallas_src>
import jax
import jax.numpy as jnp
from jax.experimental import pallas as pl
from jax.experimental.pallas import tpu as pltpu

EPSILON = 1e-06

# Tile targets (f32): 2 inputs x double-buffer x TN*TL*4 B ~= 8 MiB live.
_TN_TARGET = 256
_TL_TARGET = 2048


def _round_up(x, m):
    return ((x + m - 1) // m) * m


def _iou_rows_kernel(yp_ref, yt_ref, iou_ref, inter_acc, sq_acc):
    """Per-row IoU with the spatial reduction tiled along grid axis 1."""
    j = pl.program_id(1)

    @pl.when(j == 0)
    def _():
        inter_acc[...] = jnp.zeros_like(inter_acc)
        sq_acc[...] = jnp.zeros_like(sq_acc)

    yp = yp_ref[...].astype(jnp.float32)
    yt = yt_ref[...].astype(jnp.float32)

    # Two fused lane reductions instead of three (union = sq - inter).
    inter_acc[...] += jnp.sum(yt * yp, axis=-1, keepdims=True)
    sq_acc[...] += jnp.sum(yt * yt + yp * yp, axis=-1, keepdims=True)

    @pl.when(j == pl.num_programs(1) - 1)
    def _():
        inter = inter_acc[...]
        union = sq_acc[...] - inter
        iou_ref[...] = (inter + EPSILON) / (union + EPSILON)


def iou_loss(y_pred, y_true):
    """IoU loss matching the PyTorch module's forward pass.

    y_pred, y_true: (B, C, H, W) float arrays (f32 or bf16). Returns f32 scalar.
    """
    assert y_pred.shape == y_true.shape
    B, C, H, W = y_pred.shape
    N = B * C
    L = H * W

    yp2 = y_pred.reshape(N, L)
    yt2 = y_true.reshape(N, L)

    # Sublane alignment depends on dtype packing (f32: 8, bf16: 16, int8/fp8: 32).
    itemsize = jnp.dtype(y_pred.dtype).itemsize
    align_n = {4: 8, 2: 16, 1: 32}.get(itemsize, 8)

    if N <= _TN_TARGET:
        TN = _round_up(N, align_n)
        N_pad = TN
    else:
        TN = _round_up(_TN_TARGET, align_n)
        N_pad = _round_up(N, TN)

    if L <= _TL_TARGET:
        TL = _round_up(L, 128)
        L_pad = TL
    else:
        TL = _TL_TARGET
        L_pad = _round_up(L, TL)

    if (N_pad, L_pad) != (N, L):
        # Zero padding contributes nothing to the per-row sums; padded rows are
        # sliced off before the mean below.
        pad = ((0, N_pad - N), (0, L_pad - L))
        yp2 = jnp.pad(yp2, pad)
        yt2 = jnp.pad(yt2, pad)

    grid = (N_pad // TN, L_pad // TL)

    cost = pl.CostEstimate(
        flops=5 * N_pad * L_pad,
        transcendentals=0,
        bytes_accessed=2 * N_pad * L_pad * itemsize + N_pad * 4,
    )

    iou_rows = pl.pallas_call(
        _iou_rows_kernel,
        out_shape=jax.ShapeDtypeStruct((N_pad, 1), jnp.float32),
        grid_spec=pltpu.PrefetchScalarGridSpec(
            num_scalar_prefetch=0,
            grid=grid,
            in_specs=[
                pl.BlockSpec((TN, TL), lambda i, j: (i, j)),
                pl.BlockSpec((TN, TL), lambda i, j: (i, j)),
            ],
            out_specs=pl.BlockSpec((TN, 1), lambda i, j: (i, 0)),
            scratch_shapes=[
                pltpu.VMEM((TN, 1), jnp.float32),   # inter accumulator
                pltpu.VMEM((TN, 1), jnp.float32),   # yt^2 + yp^2 accumulator
            ],
        ),
        compiler_params=pltpu.CompilerParams(
            dimension_semantics=("parallel", "arbitrary"),
        ),
        cost_estimate=cost,
    )(yp2, yt2)

    # Final reduction over the TRUE rows only (excludes alignment padding),
    # matching torch.mean(iou) over B*C entries.
    return 1.0 - jnp.mean(iou_rows[:N, 0])


def iou_loss_ref(y_pred, y_true):
    """Pure-JAX reference mirroring the PyTorch module."""
    def op_sum(x):
        return x.sum(-1).sum(-1)
    inter = op_sum(y_true * y_pred)
    union = op_sum(y_true ** 2) + op_sum(y_pred ** 2) - op_sum(y_true * y_pred)
    iou = (inter + EPSILON) / (union + EPSILON)
    return 1.0 - jnp.mean(iou)


if __name__ == "__main__":
    key = jax.random.PRNGKey(0)
    k1, k2 = jax.random.split(key)
    B, C, H, W = 2, 4, 16, 16
    # Heatmap-like inputs in [0, 1)
    y_pred = jax.random.uniform(k1, (B, C, H, W), dtype=jnp.float32)
    y_true = jax.random.uniform(k2, (B, C, H, W), dtype=jnp.float32)

    loss = jax.block_until_ready(iou_loss(y_pred, y_true))
    loss_ref = jax.block_until_ready(iou_loss_ref(y_pred, y_true))

    assert jnp.allclose(loss, loss_ref, rtol=1e-5, atol=1e-6), (loss, loss_ref)
    print("KERNEL_OK")
</pallas_src>

<mosaic_0001>
module attributes {stable_mosaic.version = 11 : i64} {
  func.func @_iou_rows_kernel(%arg0: i32, %arg1: i32, %arg2: memref<8x256xf32, #tpu.memory_space<vmem>>, %arg3: memref<8x256xf32, #tpu.memory_space<vmem>>, %arg4: memref<8x1xf32, #tpu.memory_space<vmem>>, %arg5: memref<8x1xf32, #tpu.memory_space<vmem>>, %arg6: memref<8x1xf32, #tpu.memory_space<vmem>>) attributes {dimension_semantics = [#tpu.dimension_semantics<parallel>, #tpu.dimension_semantics<arbitrary>], iteration_bounds = array<i64: 1, 1>, scalar_prefetch = 0 : i64, scratch_operands = 2 : i64, tpu.core_type = #tpu.core_type<tc>, window_params = [{transform_indices = @transform_0, window_bounds = array<i64: 8, 256>}, {transform_indices = @transform_1, window_bounds = array<i64: 8, 256>}, {transform_indices = @transform_2, window_bounds = array<i64: 8, 1>}]} {
    %c0_i32 = arith.constant 0 : i32
    %0 = arith.cmpi eq, %arg1, %c0_i32 : i32
    %1 = arith.extui %0 : i1 to i32
    %c0_i32_0 = arith.constant 0 : i32
    %2 = arith.cmpi ne, %1, %c0_i32_0 : i32
    scf.if %2 {
      %cst_15 = arith.constant 0.000000e+00 : f32
      %22 = vector.broadcast %cst_15 : f32 to vector<8x1xf32>
      %c0_16 = arith.constant 0 : index
      %c0_17 = arith.constant 0 : index
      %23 = vector.load %arg5[%c0_16, %c0_17] : memref<8x1xf32, #tpu.memory_space<vmem>>, vector<8x1xf32>
      tpu.vector_store %arg5[%c0_16, %c0_17], %22 {strides = array<i32>} : memref<8x1xf32, #tpu.memory_space<vmem>>, vector<8x1xf32>,
      %cst_18 = arith.constant 0.000000e+00 : f32
      %24 = vector.broadcast %cst_18 : f32 to vector<8x1xf32>
      %c0_19 = arith.constant 0 : index
      %c0_20 = arith.constant 0 : index
      %25 = vector.load %arg6[%c0_19, %c0_20] : memref<8x1xf32, #tpu.memory_space<vmem>>, vector<8x1xf32>
      tpu.vector_store %arg6[%c0_19, %c0_20], %24 {strides = array<i32>} : memref<8x1xf32, #tpu.memory_space<vmem>>, vector<8x1xf32>,
    } else {
    }
    %c0 = arith.constant 0 : index
    %c0_1 = arith.constant 0 : index
    %3 = vector.load %arg2[%c0, %c0_1] : memref<8x256xf32, #tpu.memory_space<vmem>>, vector<8x256xf32>
    %c0_2 = arith.constant 0 : index
    %c0_3 = arith.constant 0 : index
    %4 = vector.load %arg3[%c0_2, %c0_3] : memref<8x256xf32, #tpu.memory_space<vmem>>, vector<8x256xf32>
    %c0_4 = arith.constant 0 : index
    %c0_5 = arith.constant 0 : index
    %5 = vector.load %arg5[%c0_4, %c0_5] : memref<8x1xf32, #tpu.memory_space<vmem>>, vector<8x1xf32>
    %6 = arith.mulf %4, %3 : vector<8x256xf32>
    %cst = arith.constant dense<0.000000e+00> : vector<8xf32>
    %7 = vector.multi_reduction <add>, %6, %cst [1] : vector<8x256xf32> to vector<8xf32>
    %8 = vector.shape_cast %7 : vector<8xf32> to vector<8x1xf32>
    %9 = arith.addf %5, %8 : vector<8x1xf32>
    %c0_6 = arith.constant 0 : index
    %c0_7 = arith.constant 0 : index
    %10 = vector.load %arg5[%c0_6, %c0_7] : memref<8x1xf32, #tpu.memory_space<vmem>>, vector<8x1xf32>
    tpu.vector_store %arg5[%c0_6, %c0_7], %9 {strides = array<i32>} : memref<8x1xf32, #tpu.memory_space<vmem>>, vector<8x1xf32>,
    %c0_8 = arith.constant 0 : index
    %c0_9 = arith.constant 0 : index
    %11 = vector.load %arg6[%c0_8, %c0_9] : memref<8x1xf32, #tpu.memory_space<vmem>>, vector<8x1xf32>
    %12 = arith.mulf %4, %4 : vector<8x256xf32>
    %13 = arith.mulf %3, %3 : vector<8x256xf32>
    %14 = arith.addf %12, %13 : vector<8x256xf32>
    %cst_10 = arith.constant dense<0.000000e+00> : vector<8xf32>
    %15 = vector.multi_reduction <add>, %14, %cst_10 [1] : vector<8x256xf32> to vector<8xf32>
    %16 = vector.shape_cast %15 : vector<8xf32> to vector<8x1xf32>
    %17 = arith.addf %11, %16 : vector<8x1xf32>
    %c0_11 = arith.constant 0 : index
    %c0_12 = arith.constant 0 : index
    %18 = vector.load %arg6[%c0_11, %c0_12] : memref<8x1xf32, #tpu.memory_space<vmem>>, vector<8x1xf32>
    tpu.vector_store %arg6[%c0_11, %c0_12], %17 {strides = array<i32>} : memref<8x1xf32, #tpu.memory_space<vmem>>, vector<8x1xf32>,
    %c0_i32_13 = arith.constant 0 : i32
    %19 = arith.cmpi eq, %arg1, %c0_i32_13 : i32
    %20 = arith.extui %19 : i1 to i32
    %c0_i32_14 = arith.constant 0 : i32
    %21 = arith.cmpi ne, %20, %c0_i32_14 : i32
    scf.if %21 {
      %c0_15 = arith.constant 0 : index
      %c0_16 = arith.constant 0 : index
      %22 = vector.load %arg5[%c0_15, %c0_16] : memref<8x1xf32, #tpu.memory_space<vmem>>, vector<8x1xf32>
      %c0_17 = arith.constant 0 : index
      %c0_18 = arith.constant 0 : index
      %23 = vector.load %arg6[%c0_17, %c0_18] : memref<8x1xf32, #tpu.memory_space<vmem>>, vector<8x1xf32>
      %24 = arith.subf %23, %22 : vector<8x1xf32>
      %cst_19 = arith.constant 9.99999997E-7 : f32
      %25 = vector.broadcast %cst_19 : f32 to vector<8x1xf32>
      %26 = arith.addf %22, %25 : vector<8x1xf32>
      %cst_20 = arith.constant 9.99999997E-7 : f32
      %27 = vector.broadcast %cst_20 : f32 to vector<8x1xf32>
      %28 = arith.addf %24, %27 : vector<8x1xf32>
      %29 = arith.divf %26, %28 : vector<8x1xf32>
      %c0_21 = arith.constant 0 : index
      %c0_22 = arith.constant 0 : index
      %30 = vector.load %arg4[%c0_21, %c0_22] : memref<8x1xf32, #tpu.memory_space<vmem>>, vector<8x1xf32>
      tpu.vector_store %arg4[%c0_21, %c0_22], %29 {strides = array<i32>} : memref<8x1xf32, #tpu.memory_space<vmem>>, vector<8x1xf32>,
    } else {
    }
    return
  }
  func.func @transform_0(%arg0: i32, %arg1: i32) -> (i32, i32) {
    %c0_i32 = arith.constant 0 : i32
    return %arg0, %arg1 : i32, i32
  }
  func.func @transform_1(%arg0: i32, %arg1: i32) -> (i32, i32) {
    %c0_i32 = arith.constant 0 : i32
    return %arg0, %arg1 : i32, i32
  }
  func.func @transform_2(%arg0: i32, %arg1: i32) -> (i32, i32) {
    %c0_i32 = arith.constant 0 : i32
    %c0_i32_0 = arith.constant 0 : i32
    return %arg0, %c0_i32 : i32, i32
  }
}

</mosaic_0001>

<bundles_post_ra>
// kernel: tpu_custom_call.1
= control target key start
LH: loop header
LB: loop body
LE: loop exit
PB: predicated region body
PF: predicated region fallthrough
CT: control target
= control target key end

     0   :  { %7 = vsyncpa [#allocation5], 0  ;;  %s187_s0 = inlined_call_operand.hbm [shape: f32[8,256], index: 0, kind: input, shape index: {}]   ;;  %s188_s1 = inlined_call_operand.hbm [shape: f32[8,256], index: 1, kind: input, shape index: {}]   ;;  %s189_s2 = inlined_call_operand.vmem [shape: f32[8,1], index: 2, kind: output, shape index: {}]  }
   0x1   :  { %8 = vsyncpa [#allocation7], 0  ;;  %s137_s9 = smov [#allocation4]   ;;  %s138_s11 = smov [#allocation6]  }
   0x2   :  { %s15_s10 = sshll.u32 %s137_s9, 4  ;;  %s25_s12 = sshll.u32 %s138_s11, 4  ;;  %s16_s10 = int_to_ptr.vmem [resolvable:$true] %s15_s10  ;;  %s26_s12 = int_to_ptr.vmem [resolvable:$true] %s25_s12 }
   0x3   :  { %s89_s15 = scalar_lea.hbm %s187_s0, 256 }
   0x4   :  { %p90_p0 = scmp.ne.s32.totalorder %s187_s0, %s89_s15  ;;  %p93_p1 = scmp.lt.u32.totalorder %s89_s15, %s187_s0 }
   0x6   :  { %p95_p2 = pnand %p93_p1, %p90_p0 }
   0x8   :  { %98 = shalt.err (!%p95_p2)
}
   0x9   :  { %s99_s20 = scalar_lea.vmem %s16_s10, 256  ;;  %p104_p4 = scmp.lt.s32.totalorder %s16_s10, %s16_s10 }
   0xa   :  { %p100_p3 = scmp.ne.s32.totalorder %s16_s10, %s99_s20  ;;  %p105_p5 = scmp.lt.s32.totalorder %s99_s20, %s99_s20 }
   0xc   :  { %p106_p6 = por %p105_p5, %p104_p4 }
   0xe   :  { %p107_p7 = pnand %p106_p6, %p100_p3 }
  0x10   :  { %110 = shalt.err (!%p107_p7)
}
  0x11   :  { %18 = dma.hbm_to_vmem [thread:$0]  %s187_s0, 256, %s16_s10, [#allocation5]  }
  0x12   :  { %s111_s25 = scalar_lea.hbm %s188_s1, 256 }
  0x13   :  { %p112_p8 = scmp.ne.s32.totalorder %s188_s1, %s111_s25  ;;  %p115_p9 = scmp.lt.u32.totalorder %s111_s25, %s188_s1 }
  0x15   :  { %p117_p10 = pnand %p115_p9, %p112_p8 }
  0x17   :  { %120 = shalt.err (!%p117_p10)
}
  0x18   :  { %s121_s30 = scalar_lea.vmem %s26_s12, 256  ;;  %p126_p12 = scmp.lt.s32.totalorder %s26_s12, %s26_s12 }
  0x19   :  { %p122_p11 = scmp.ne.s32.totalorder %s26_s12, %s121_s30  ;;  %p127_p13 = scmp.lt.s32.totalorder %s121_s30, %s121_s30 }
  0x1b   :  { %p128_p0 = por %p127_p13, %p126_p12 }
  0x1d   :  { %p129_p1 = pnand %p128_p0, %p122_p11 }
  0x1f   :  { %132 = shalt.err (!%p129_p1)
}
  0x20   :  { %28 = dma.hbm_to_vmem [thread:$0]  %s188_s1, 256, %s26_s12, [#allocation7]  }
  0x21   :  { %133 = dma.done.wait [#allocation5], 256  }
  0x22   :  { %134 = vsyncadd [#allocation5], 4294967040 }
  0x23   :  { %135 = dma.done.wait [#allocation7], 256  }
  0x24   :  { %136 = vsyncadd [#allocation7], 4294967040  ;;  %vm39_vm0 = vcmask 7168   ;;  %v139_v0 = vmov 0.0   ;;  %v42_v1 = vld [vmem:[#allocation4] sm:$0xff]  ;;  %v43_v2 = vld [vmem:[#allocation4 + $0x8] sm:$0xff] }
  0x25   :  { %40 = vst.msk [vmem:[#allocation2] sm:$0xff] %vm39_vm0, %v139_v0  ;;  %41 = vst.msk [vmem:[#allocation3] sm:$0xff] %vm39_vm0, %v139_v0  ;;  %v44_v3 = vld [vmem:[#allocation6] sm:$0xff]  ;;  %v45_v4 = vld [vmem:[#allocation6 + $0x8] sm:$0xff]  ;;  %v58_v7 = vmul.f32 %v42_v1, %v42_v1  ;;  %v59_v8 = vmul.f32 %v43_v2, %v43_v2 }
  0x26   :  { %v47_v5 = vmul.f32 %v44_v3, %v42_v1  ;;  %v56_v6 = vmul.f32 %v44_v3, %v44_v3  ;;  %v48_v9 = vmul.f32 %v45_v4, %v43_v2  ;;  %v57_v10 = vmul.f32 %v45_v4, %v45_v4 }
  0x28   :  { %v60_v11 = vadd.f32 %v58_v7, %v56_v6  ;;  %v49_v12 = vadd.f32 %v48_v9, %v47_v5  ;;  %v61_v13 = vadd.f32 %v59_v8, %v57_v10 }
  0x2a   :  { %50 = vadd.xlane.f32.xlu0 %v49_v12  ;;  %v62_v14 = vadd.f32 %v61_v13, %v60_v11 }
  0x2c   :  { %v46_v15 = vld [vmem:[#allocation2] sm:$0xff]  ;;  %v55_v18 = vld [vmem:[#allocation3] sm:$0xff] }
  0x2e   :  { %63 = vadd.xlane.f32.xlu0 %v62_v14 }
  0xb7   :  { %v51_v16 = vpop.xlane.xlu0 %50 }
  0xb8   :  { %v52_v17 = vadd.f32 %v51_v16, %v46_v15 }
  0xba   :  { %54 = vst.msk [vmem:[#allocation2] sm:$0xff] %vm39_vm0, %v52_v17 }
  0xbb   :  { %v64_v19 = vpop.xlane.xlu0 %63 }
  0xbc   :  { %v65_v20 = vadd.f32 %v64_v19, %v55_v18 }
  0xbe   :  { %66 = vst.msk [vmem:[#allocation3] sm:$0xff] %vm39_vm0, %v65_v20 }
  0xc1   :  { %v70_v21 = vld [vmem:[#allocation2] sm:$0xff] }
  0xc2   :  { %v73_v25 = vadd.f32 1e-06, %v70_v21 }
  0xc5   :  { %v71_v22 = vld [vmem:[#allocation3] sm:$0xff] }
  0xc6   :  { %v72_v23 = vsub.f32 %v71_v22, %v70_v21 }
  0xc8   :  { %v74_v24 = vadd.f32 1e-06, %v72_v23 }
  0xca   :  { %87 = vrcp.f32 %v74_v24 }
  0xd4   :  { %v88_v26 = vpop.eup %87 }
  0xd5   :  { %v76_v27 = vmul.f32 %v88_v26, %v73_v25 }
  0xd7   :  { %77 = vst.msk [vmem:[%s189_s2] sm:$0xff] %vm39_vm0, %v76_v27 }
  0xd8   :  { %82 = vsyncpa [#allocation5], 1 }
  0xd9   :  { %83 = vsyncpa [#allocation7], 1 }

</bundles_post_ra>
